<compile_context>
chip_gen: v6e
topology: v6e:2x2x1
jax: 0.10.0
libtpu: 0.0.40
codegen_flags: <defaults>
</compile_context>

<pallas_src>
import jax
import jax.numpy as jnp
from jax.experimental import pallas as pl
from jax.experimental.pallas import tpu as pltpu

NUM_UNITS = 100


def simple_model_kernel(x_ref, p_ref, scale_ref, y_ref):
    # x_ref: (B, 1) VMEM, p_ref: (3, N) VMEM (rows = a, b, c), scale_ref: (1,) SMEM
    x = x_ref[...]                      # (B, 1)
    a = p_ref[0:1, :]                   # (1, N)
    b = p_ref[1:2, :]                   # (1, N)
    c = p_ref[2:3, :]                   # (1, N)

    # x @ a.T + b.T  ==  broadcast outer product (B,1)*(1,N) + bias -> (B, N)
    s = x * a + b
    z = 1.0 / (1.0 + jnp.exp(-s))       # exact sigmoid (exp on the EUP slot)

    # z @ c  ==  lane reduction of z * c_row -> (B, 1);
    # single combined norm scale applied only to the B-element result.
    y = jnp.sum(z * c, axis=-1, keepdims=True) * scale_ref[0]
    y_ref[...] = y.astype(y_ref.dtype)


def simple_model_forward(x, a, b, c):
    """x: (B, 1) f32; a, b, c: (num_units, 1) f32 (PyTorch parameter layout)."""
    B = x.shape[0]
    N = a.shape[0]

    # Pack parameters into one (3, N) slab -> one DMA, one vreg tile.
    params = jnp.concatenate(
        [a.reshape(1, N), b.reshape(1, N), c.reshape(1, N)], axis=0
    ).astype(jnp.float32)

    # Combined normalization reciprocal 1 / ((||a|| + ||b||) * ||c||),
    # computed once on the scalar/XLA side and handed to the kernel via SMEM.
    na = jnp.sqrt(jnp.sum(a * a))
    nb = jnp.sqrt(jnp.sum(b * b))
    nc = jnp.sqrt(jnp.sum(c * c))
    scale = (1.0 / ((na + nb) * nc)).reshape(1).astype(jnp.float32)

    return pl.pallas_call(
        simple_model_kernel,
        out_shape=jax.ShapeDtypeStruct((B, 1), jnp.float32),
        in_specs=[
            pl.BlockSpec(memory_space=pltpu.MemorySpace.VMEM),   # x     (B, 1)
            pl.BlockSpec(memory_space=pltpu.MemorySpace.VMEM),   # params (3, N)
            pl.BlockSpec(memory_space=pltpu.MemorySpace.SMEM),   # scale  (1,)
        ],
        out_specs=pl.BlockSpec(memory_space=pltpu.MemorySpace.VMEM),
    )(x, params, scale)
    # TODO(synk): if B is ever scaled into the thousands, tile the batch axis with a
    # 'parallel' grid and present a lane-dense (…,128) output instead of (B, 1).


def reference_forward(x, a, b, c):
    """Pure-JAX mirror of the PyTorch forward for validation."""
    na = jnp.linalg.norm(a)
    nb = jnp.linalg.norm(b)
    nc = jnp.linalg.norm(c)
    z = jax.nn.sigmoid(x @ a.T + b.T) / (na + nb)
    return (z @ c) / nc


if __name__ == "__main__":
    key = jax.random.PRNGKey(0)
    kx, ka, kb, kc = jax.random.split(key, 4)

    B = 8
    x = jax.random.normal(kx, (B, 1), dtype=jnp.float32)
    a = jax.random.normal(ka, (NUM_UNITS, 1), dtype=jnp.float32)
    b = jax.random.normal(kb, (NUM_UNITS, 1), dtype=jnp.float32)
    c = jax.random.normal(kc, (NUM_UNITS, 1), dtype=jnp.float32)

    y = simple_model_forward(x, a, b, c)
    y = jax.block_until_ready(y)

    y_ref = reference_forward(x, a, b, c)
    assert y.shape == (B, 1)
    assert jnp.allclose(y, y_ref, atol=1e-5, rtol=1e-5), (y, y_ref)

    print("KERNEL_OK")
</pallas_src>

<mosaic_0001>
module attributes {stable_mosaic.version = 11 : i64} {
  func.func @simple_model_kernel(%arg0: memref<8x1xf32, #tpu.memory_space<vmem>>, %arg1: memref<3x100xf32, #tpu.memory_space<vmem>>, %arg2: memref<1xf32, #tpu.memory_space<smem>>, %arg3: memref<8x1xf32, #tpu.memory_space<vmem>>) attributes {dimension_semantics = [], scalar_prefetch = 0 : i64, scratch_operands = 0 : i64, tpu.core_type = #tpu.core_type<tc>} {
    %c0 = arith.constant 0 : index
    %c0_0 = arith.constant 0 : index
    %0 = vector.load %arg0[%c0, %c0_0] : memref<8x1xf32, #tpu.memory_space<vmem>>, vector<8x1xf32>
    %c0_1 = arith.constant 0 : index
    %c0_2 = arith.constant 0 : index
    %1 = vector.load %arg1[%c0_1, %c0_2] : memref<3x100xf32, #tpu.memory_space<vmem>>, vector<1x100xf32>
    %c1 = arith.constant 1 : index
    %c0_3 = arith.constant 0 : index
    %2 = vector.load %arg1[%c1, %c0_3] : memref<3x100xf32, #tpu.memory_space<vmem>>, vector<1x100xf32>
    %c2 = arith.constant 2 : index
    %c0_4 = arith.constant 0 : index
    %3 = vector.load %arg1[%c2, %c0_4] : memref<3x100xf32, #tpu.memory_space<vmem>>, vector<1x100xf32>
    %4 = vector.broadcast %0 : vector<8x1xf32> to vector<8x100xf32>
    %5 = vector.broadcast %1 : vector<1x100xf32> to vector<8x100xf32>
    %6 = arith.mulf %4, %5 : vector<8x100xf32>
    %7 = vector.broadcast %2 : vector<1x100xf32> to vector<8x100xf32>
    %8 = arith.addf %6, %7 : vector<8x100xf32>
    %cst = arith.constant 0.000000e+00 : f32
    %9 = vector.broadcast %cst : f32 to vector<8x100xf32>
    %10 = arith.subf %9, %8 : vector<8x100xf32>
    %11 = math.exp %10 : vector<8x100xf32>
    %cst_5 = arith.constant 1.000000e+00 : f32
    %12 = vector.broadcast %cst_5 : f32 to vector<8x100xf32>
    %13 = arith.addf %12, %11 : vector<8x100xf32>
    %cst_6 = arith.constant 1.000000e+00 : f32
    %14 = vector.broadcast %cst_6 : f32 to vector<8x100xf32>
    %15 = arith.divf %14, %13 : vector<8x100xf32>
    %16 = vector.broadcast %3 : vector<1x100xf32> to vector<8x100xf32>
    %17 = arith.mulf %15, %16 : vector<8x100xf32>
    %cst_7 = arith.constant dense<0.000000e+00> : vector<8xf32>
    %18 = vector.multi_reduction <add>, %17, %cst_7 [1] : vector<8x100xf32> to vector<8xf32>
    %19 = vector.shape_cast %18 : vector<8xf32> to vector<8x1xf32>
    %c0_8 = arith.constant 0 : index
    %20 = memref.load %arg2[%c0_8] : memref<1xf32, #tpu.memory_space<smem>>
    %21 = vector.broadcast %20 : f32 to vector<8x1xf32>
    %22 = arith.mulf %19, %21 : vector<8x1xf32>
    %c0_9 = arith.constant 0 : index
    %c0_10 = arith.constant 0 : index
    %23 = vector.load %arg3[%c0_9, %c0_10] : memref<8x1xf32, #tpu.memory_space<vmem>>, vector<8x1xf32>
    tpu.vector_store %arg3[%c0_9, %c0_10], %22 {strides = array<i32>} : memref<8x1xf32, #tpu.memory_space<vmem>>, vector<8x1xf32>,
    return
  }
}

</mosaic_0001>

<bundles_post_ra>
// kernel: tpu_custom_call.1
= control target key start
LH: loop header
LB: loop body
LE: loop exit
PB: predicated region body
PF: predicated region fallthrough
CT: control target
= control target key end

     0   :  { %v67_v0 = vmov 0   ;;  %vm45_vm0 = vcmask 818176   ;;  %vm52_vm1 = vcmask 7168   ;;  %s106_s0 = inlined_call_operand.vmem [shape: f32[8,1], index: 0, kind: input, shape index: {}]   ;;  %s107_s1 = inlined_call_operand.vmem [shape: f32[3,100], index: 1, kind: input, shape index: {}]   ;;  %s108_s2 = inlined_call_operand.<no memory space> [shape: f32[1], index: 2, kind: input, shape index: {}]   ;;  %s109_s3 = inlined_call_operand.vmem [shape: f32[8,1], index: 3, kind: output, shape index: {}]  }
   0x1   :  { %62 = vset.pattern.permute.xlu0 %v67_v0  ;;  %v15_v1 = vld [vmem:[%s106_s0] sm:$0xff]  ;;  %v50_v15 = vstv %s108_s2 }
   0x2   :  { %21 = vperm.xlu0 %62, %v15_v1   ;;  %v58_v2 = vld [vmem:[%s107_s1] ss:$0 sm:$0xff]  ;;  %v59_v3 = vld [vmem:[%s107_s1 + $0x1] ss:$0 sm:$0xff]  ;;  %v60_v11 = vld [vmem:[%s107_s1 + $0x2] ss:$0 sm:$0xff] }
  0x7d   :  { %v22_v4 = vpop.permute.xlu0 %21 }
  0x7e   :  { %v28_v5 = vmul.f32 %v58_v2, %v22_v4 }
  0x80   :  { %v33_v6 = vadd.f32 %v59_v3, %v28_v5 }
  0x82   :  { %v34_v7 = vsub.f32 0.0, %v33_v6 }
  0x84   :  { %v35_v8 = vmul.f32 1.442695, %v34_v7 }
  0x86   :  { %63 = vpow2.f32 %v35_v8 }
  0x93   :  { %v64_v9 = vpop.eup %63 }
  0x94   :  { %v37_v10 = vadd.f32 1.0, %v64_v9 }
  0x96   :  { %65 = vrcp.f32 %v37_v10 }
  0xa3   :  { %v66_v12 = vpop.eup %65 }
  0xa4   :  { %v44_v13 = vmul.f32 %v66_v12, %v60_v11 }
  0xa6   :  { %v46_v14 = vsel %vm45_vm0, %v44_v13, 0.0 }
  0xa7   :  { %47 = vadd.xlane.f32.xlu0 %v46_v14 }
 0x130   :  { %v48_v16 = vpop.xlane.xlu0 %47 }
 0x131   :  { %v51_v17 = vmul.f32 %v50_v15, %v48_v16 }
 0x133   :  { %53 = vst.msk [vmem:[%s109_s3] sm:$0xff] %vm52_vm1, %v51_v17 }

</bundles_post_ra>
